<compile_context>
chip_gen: v5e
topology: v5e:2x2
jax: 0.10.0
libtpu: 0.0.40
codegen_flags: <defaults>
</compile_context>

<pallas_src>
import jax
import jax.numpy as jnp
from jax import lax
from jax.experimental import pallas as pl
from jax.experimental.pallas import tpu as pltpu


def _round_up(a: int, m: int) -> int:
    return ((a + m - 1) // m) * m


def _cdiv(a: int, b: int) -> int:
    return (a + b - 1) // b


def _vmem_estimate(th, wo, c2, in_bytes, w_bytes, out_bytes):
    """Rough per-step VMEM footprint ((8,128)-padded, double-buffered operands
    plus f32 working arrays); used only to clamp the row tile."""
    r = th * wo
    wo8 = _round_up(wo, 8)
    c2l = _round_up(c2, 128)
    r8 = _round_up(r, 8)
    inp = 2 * th * 2 * wo8 * c2l * in_bytes        # input block, 2 buffers
    wgt = 2 * 2 * _round_up(c2, 8) * c2l * w_bytes  # folded weight, 2 buffers
    vecs = 2 * 2 * 8 * c2l * 4                      # s / b row vectors (tiny)
    outp = 2 * r8 * c2l * out_bytes                 # output block, 2 buffers
    work = 5 * r8 * c2l * 4                         # f32 halves / squares / acc
    return inp + wgt + vecs + outp + work


def _merge_call(xr, w2, s_vec, b_vec, *, th, wo, c2, rows, out_dtype, eps,
                vmem_limit_bytes):
    """Fused 2x2 gather + LayerNorm(4C) + Linear(4C->2C, no bias)."""
    r = th * wo
    n_blk = _cdiv(xr.shape[0], th)

    def kernel(x_ref, w_ref, s_ref, b_ref, o_ref):
        # x_ref: (th, 2, Wo, 2C)  row-parity pairs; lanes = [col-even C | col-odd C]
        # w_ref: (2, 2C, 2C)      gamma-folded weight, row halves in matching order
        # s_ref: (1, 2C)          colsum(gamma * W^T)   (f32)
        # b_ref: (1, 2C)          beta @ W^T            (f32)
        # o_ref: (th*Wo, 2C)
        #
        # NOTE: when Wo % 8 != 0 the reshape below crosses sublane-tile
        # boundaries and costs a VMEM relayout; on this memory-bound op it
        # overlaps with the DMAs.
        # TODO(synk): keep the math 3-D (dot_general on a (th, Wo, 2C) lhs)
        # once Mosaic lowers that shape without an internal reshape.
        h0 = x_ref[:, 0].reshape(r, c2)     # even input rows: [x0 | x2]
        h1 = x_ref[:, 1].reshape(r, c2)     # odd  input rows: [x1 | x3]
        h0f = h0.astype(jnp.float32)
        h1f = h1.astype(jnp.float32)

        # Single-pass LayerNorm stats over the (virtual) 4C concat, in f32.
        # E[x^2] - mean^2 is adequate for LN activations; eps guards tiny
        # negative variances.
        s1 = h0f.sum(-1, keepdims=True) + h1f.sum(-1, keepdims=True)
        s2 = ((h0f * h0f).sum(-1, keepdims=True)
              + (h1f * h1f).sum(-1, keepdims=True))
        inv_n = 1.0 / (2.0 * c2)            # == 1 / (4*C)
        mean = s1 * inv_n
        var = s2 * inv_n - mean * mean
        rstd = lax.rsqrt(var + eps)

        # LayerNorm affine folded into the weight:
        #   out = rstd*(m @ (gamma*W^T)) + (beta@W^T - rstd*mean*colsum(gamma*W^T))
        acc = (jnp.dot(h0.astype(w_ref.dtype), w_ref[0],
                       preferred_element_type=jnp.float32)
               + jnp.dot(h1.astype(w_ref.dtype), w_ref[1],
                         preferred_element_type=jnp.float32))
        o_ref[...] = (rstd * acc
                      + (b_ref[...] - (rstd * mean) * s_ref[...])
                      ).astype(o_ref.dtype)

    return pl.pallas_call(
        kernel,
        out_shape=jax.ShapeDtypeStruct((rows, c2), out_dtype),
        grid=(n_blk,),
        in_specs=[
            pl.BlockSpec((th, 2, wo, c2), lambda i: (i, 0, 0, 0)),
            pl.BlockSpec((2, c2, c2), lambda i: (0, 0, 0)),
            pl.BlockSpec((1, c2), lambda i: (0, 0)),
            pl.BlockSpec((1, c2), lambda i: (0, 0)),
        ],
        out_specs=pl.BlockSpec((r, c2), lambda i: (i, 0)),
        compiler_params=pltpu.CompilerParams(
            dimension_semantics=("parallel",),
            vmem_limit_bytes=vmem_limit_bytes),
    )(xr, w2, s_vec, b_vec)


def patch_merging(x, H, W, gamma, beta, weight, *, eps=1e-5, block_rows=2048,
                  vmem_budget_bytes=24 * 2 ** 20,
                  vmem_limit_bytes=48 * 2 ** 20):
    """Forward of PatchMerging: 2x2 gather -> LayerNorm(4C) -> Linear(4C,2C).

    Args:
      x:      (B, H*W, C) input tokens.
      gamma:  (4*C,) LayerNorm weight.
      beta:   (4*C,) LayerNorm bias.
      weight: (2*C, 4*C) reduction weight (torch nn.Linear layout, no bias).
              Feed a bf16 weight to run the projection on the bf16 MXU path.
      block_rows: target merged tokens per grid step (sweep 1024..4096).
    Returns:
      (B, ceil(H/2)*ceil(W/2), 2*C), dtype of x.
    """
    B, L, C = x.shape
    assert L == H * W, "input feature has wrong size"
    assert gamma.shape == (4 * C,) and beta.shape == (4 * C,)
    assert weight.shape == (2 * C, 4 * C)

    xv = x.reshape(B, H, W, C)
    if (H % 2) or (W % 2):                  # == F.pad(x, (0,0, 0,W%2, 0,H%2))
        xv = jnp.pad(xv, ((0, 0), (0, H % 2), (0, W % 2), (0, 0)))
    Hp, Wp = xv.shape[1], xv.shape[2]
    Ho, Wo = Hp // 2, Wp // 2
    BHo, C2 = B * Ho, 2 * C
    rows = BHo * Wo
    # Free (layout-preserving) reshape exposing the 2x2 structure:
    #   xr[b*Ho+i, p, j, :] == concat(xv[b, 2i+p, 2j, :], xv[b, 2i+p, 2j+1, :])
    # so the spatial gather happens inside the kernel's BlockSpec, not in HBM.
    xr = xv.reshape(BHo, 2, Wo, C2)

    # Fold LayerNorm's affine into the reduction weight (done once, in f32).
    wt = weight.T.astype(jnp.float32)                    # (4C, 2C)
    wg = gamma.astype(jnp.float32)[:, None] * wt         # (4C, 2C) = diag(g) W^T
    s_vec = jnp.sum(wg, axis=0, keepdims=True)           # (1, 2C) == gamma @ W^T
    b_vec = beta.astype(jnp.float32)[None, :] @ wt       # (1, 2C) == beta  @ W^T

    # Re-order weight rows to the kernel's lane order: even-row half sees
    # [x0 | x2], odd-row half sees [x1 | x3] (torch concat order x0,x1,x2,x3).
    def halves_of(t):                                    # t: leading dim 4C
        return jnp.stack([
            jnp.concatenate([t[0 * C:1 * C], t[2 * C:3 * C]], axis=0),
            jnp.concatenate([t[1 * C:2 * C], t[3 * C:4 * C]], axis=0)])

    w2 = halves_of(wg).astype(weight.dtype)              # (2, 2C, 2C)

    in_b = jnp.dtype(x.dtype).itemsize
    w_b = jnp.dtype(weight.dtype).itemsize

    def est(t):
        return _vmem_estimate(t, Wo, C2, in_b, w_b, in_b)

    # Row tiling: `th` row-pairs (th*Wo merged tokens) per grid step.
    th = max(1, min(BHo, max(1, block_rows // max(Wo, 1))))
    # Keep >=2 grid steps (>=4 when there is room): shards the "parallel" axis
    # across both v7x TensorCores and keeps the pipeline primed.
    min_blk = 4 if BHo >= 32 else (2 if BHo >= 16 else 1)
    if min_blk > 1:
        th = min(th, max(8, ((BHo // min_blk) // 8) * 8))
    if th < BHo:
        th = max(8, (th // 8) * 8)          # sublane-aligned output blocks
    while th > 8 and est(th) > vmem_budget_bytes:
        nth = max(8, ((th // 2) // 8) * 8)
        if nth >= th:
            break
        th = nth
    # TODO(synk): for very large stages (4C >= 3072 in f32) also tile the 2C
    # output dimension instead of only shrinking the row tile.

    out = _merge_call(xr, w2, s_vec, b_vec, th=th, wo=Wo, c2=C2, rows=rows,
                      out_dtype=x.dtype, eps=eps,
                      vmem_limit_bytes=vmem_limit_bytes)
    return out.reshape(B, Ho * Wo, C2)       # free reshape


def _reference(x, H, W, gamma, beta, weight, eps=1e-5):
    B, L, C = x.shape
    xv = x.reshape(B, H, W, C)
    if (H % 2) or (W % 2):
        xv = jnp.pad(xv, ((0, 0), (0, H % 2), (0, W % 2), (0, 0)))
    x0 = xv[:, 0::2, 0::2, :]
    x1 = xv[:, 1::2, 0::2, :]
    x2 = xv[:, 0::2, 1::2, :]
    x3 = xv[:, 1::2, 1::2, :]
    m = jnp.concatenate([x0, x1, x2, x3], axis=-1).reshape(B, -1, 4 * C)
    mean = jnp.mean(m, axis=-1, keepdims=True)
    var = jnp.mean((m - mean) ** 2, axis=-1, keepdims=True)
    mn = (m - mean) / jnp.sqrt(var + eps) * gamma + beta
    return mn @ weight.T


if __name__ == "__main__":
    key = jax.random.PRNGKey(0)
    kx, kw, kg, kb, kx2 = jax.random.split(key, 5)

    # Shapes consistent with the module's forward: x is (B, H*W, C).
    B, H, W, C = 2, 16, 16, 16
    x = jax.random.normal(kx, (B, H * W, C), dtype=jnp.float32)
    gamma = 1.0 + 0.1 * jax.random.normal(kg, (4 * C,), dtype=jnp.float32)
    beta = 0.1 * jax.random.normal(kb, (4 * C,), dtype=jnp.float32)
    weight = 0.02 * jax.random.normal(kw, (2 * C, 4 * C), dtype=jnp.float32)

    # Case 1: f32, even spatial dims (multi-step pipelined grid: 2 steps).
    out = patch_merging(x, H, W, gamma, beta, weight)
    jax.block_until_ready(out)
    ref = _reference(x, H, W, gamma, beta, weight)
    assert out.shape == (B, (H // 2) * (W // 2), 2 * C), out.shape
    assert jnp.allclose(out, ref, atol=1e-4, rtol=1e-4), "f32 mismatch vs reference"

    # Case 2: odd spatial dims exercise the zero-padding path.
    Hodd, Wodd = 15, 15
    x_odd = jax.random.normal(kx2, (B, Hodd * Wodd, C), dtype=jnp.float32)
    out_odd = patch_merging(x_odd, Hodd, Wodd, gamma, beta, weight)
    jax.block_until_ready(out_odd)
    ref_odd = _reference(x_odd, Hodd, Wodd, gamma, beta, weight)
    assert out_odd.shape == (B, 8 * 8, 2 * C), out_odd.shape
    assert jnp.allclose(out_odd, ref_odd, atol=1e-4, rtol=1e-4), "odd-pad mismatch"

    # Case 3: bf16 reduction weight (bf16 MXU path on v6e/v7x); compare against
    # a reference that uses the same rounded weight.
    w_bf16 = weight.astype(jnp.bfloat16)
    out_bf = patch_merging(x, H, W, gamma, beta, w_bf16)
    jax.block_until_ready(out_bf)
    ref_bf = _reference(x, H, W, gamma, beta, w_bf16.astype(jnp.float32))
    assert jnp.allclose(out_bf, ref_bf, atol=2e-2, rtol=2e-2), "bf16 mismatch"

    print("KERNEL_OK")
</pallas_src>

<mosaic_0001>
module attributes {stable_mosaic.version = 11 : i64} {
  func.func @kernel(%arg0: i32, %arg1: memref<8x2x8x32xf32, #tpu.memory_space<vmem>>, %arg2: memref<2x32x32xf32, #tpu.memory_space<vmem>>, %arg3: memref<1x32xf32, #tpu.memory_space<vmem>>, %arg4: memref<1x32xf32, #tpu.memory_space<vmem>>, %arg5: memref<64x32xf32, #tpu.memory_space<vmem>>) attributes {dimension_semantics = [#tpu.dimension_semantics<parallel>], iteration_bounds = array<i64: 2>, scalar_prefetch = 0 : i64, scratch_operands = 0 : i64, tpu.core_type = #tpu.core_type<tc>, window_params = [{transform_indices = @transform_0, window_bounds = array<i64: 8, 2, 8, 32>}, {pipeline_mode = #tpu.pipeline_mode<synchronous>, transform_indices = @transform_1, window_bounds = array<i64: 2, 32, 32>}, {pipeline_mode = #tpu.pipeline_mode<synchronous>, transform_indices = @transform_2, window_bounds = array<i64: 1, 32>}, {pipeline_mode = #tpu.pipeline_mode<synchronous>, transform_indices = @transform_3, window_bounds = array<i64: 1, 32>}, {transform_indices = @transform_4, window_bounds = array<i64: 64, 32>}]} {
    %c0 = arith.constant 0 : index
    %c0_0 = arith.constant 0 : index
    %c0_1 = arith.constant 0 : index
    %c0_2 = arith.constant 0 : index
    %0 = vector.load %arg1[%c0, %c0_0, %c0_1, %c0_2] : memref<8x2x8x32xf32, #tpu.memory_space<vmem>>, vector<8x1x8x32xf32>
    %1 = vector.shape_cast %0 : vector<8x1x8x32xf32> to vector<8x8x32xf32>
    %2 = vector.shape_cast %1 : vector<8x8x32xf32> to vector<64x32xf32>
    %c0_3 = arith.constant 0 : index
    %c1 = arith.constant 1 : index
    %c0_4 = arith.constant 0 : index
    %c0_5 = arith.constant 0 : index
    %3 = vector.load %arg1[%c0_3, %c1, %c0_4, %c0_5] : memref<8x2x8x32xf32, #tpu.memory_space<vmem>>, vector<8x1x8x32xf32>
    %4 = vector.shape_cast %3 : vector<8x1x8x32xf32> to vector<8x8x32xf32>
    %5 = vector.shape_cast %4 : vector<8x8x32xf32> to vector<64x32xf32>
    %cst = arith.constant dense<0.000000e+00> : vector<64xf32>
    %6 = vector.multi_reduction <add>, %2, %cst [1] : vector<64x32xf32> to vector<64xf32>
    %7 = vector.shape_cast %6 : vector<64xf32> to vector<64x1xf32>
    %cst_6 = arith.constant dense<0.000000e+00> : vector<64xf32>
    %8 = vector.multi_reduction <add>, %5, %cst_6 [1] : vector<64x32xf32> to vector<64xf32>
    %9 = vector.shape_cast %8 : vector<64xf32> to vector<64x1xf32>
    %10 = arith.addf %7, %9 : vector<64x1xf32>
    %11 = arith.mulf %2, %2 : vector<64x32xf32>
    %cst_7 = arith.constant dense<0.000000e+00> : vector<64xf32>
    %12 = vector.multi_reduction <add>, %11, %cst_7 [1] : vector<64x32xf32> to vector<64xf32>
    %13 = vector.shape_cast %12 : vector<64xf32> to vector<64x1xf32>
    %14 = arith.mulf %5, %5 : vector<64x32xf32>
    %cst_8 = arith.constant dense<0.000000e+00> : vector<64xf32>
    %15 = vector.multi_reduction <add>, %14, %cst_8 [1] : vector<64x32xf32> to vector<64xf32>
    %16 = vector.shape_cast %15 : vector<64xf32> to vector<64x1xf32>
    %17 = arith.addf %13, %16 : vector<64x1xf32>
    %cst_9 = arith.constant 1.562500e-02 : f32
    %18 = vector.broadcast %cst_9 : f32 to vector<64x1xf32>
    %19 = arith.mulf %10, %18 : vector<64x1xf32>
    %cst_10 = arith.constant 1.562500e-02 : f32
    %20 = vector.broadcast %cst_10 : f32 to vector<64x1xf32>
    %21 = arith.mulf %17, %20 : vector<64x1xf32>
    %22 = arith.mulf %19, %19 : vector<64x1xf32>
    %23 = arith.subf %21, %22 : vector<64x1xf32>
    %cst_11 = arith.constant 9.99999974E-6 : f32
    %24 = vector.broadcast %cst_11 : f32 to vector<64x1xf32>
    %25 = arith.addf %23, %24 : vector<64x1xf32>
    %26 = math.rsqrt %25 : vector<64x1xf32>
    %c0_12 = arith.constant 0 : index
    %c0_13 = arith.constant 0 : index
    %c0_14 = arith.constant 0 : index
    %27 = vector.load %arg2[%c0_12, %c0_13, %c0_14] : memref<2x32x32xf32, #tpu.memory_space<vmem>>, vector<1x32x32xf32>
    %28 = vector.shape_cast %27 : vector<1x32x32xf32> to vector<32x32xf32>
    %cst_15 = arith.constant dense<0.000000e+00> : vector<64x32xf32>
    %29 = tpu.matmul %2, %28, %cst_15 {dimension_numbers = #tpu.dot_dimension_numbers<[1], [0], [0], [1], [0, 0, 1, 1], [], []>} : vector<64x32xf32>, vector<32x32xf32>, vector<64x32xf32> -> vector<64x32xf32>
    %c1_16 = arith.constant 1 : index
    %c0_17 = arith.constant 0 : index
    %c0_18 = arith.constant 0 : index
    %30 = vector.load %arg2[%c1_16, %c0_17, %c0_18] : memref<2x32x32xf32, #tpu.memory_space<vmem>>, vector<1x32x32xf32>
    %31 = vector.shape_cast %30 : vector<1x32x32xf32> to vector<32x32xf32>
    %cst_19 = arith.constant dense<0.000000e+00> : vector<64x32xf32>
    %32 = tpu.matmul %5, %31, %cst_19 {dimension_numbers = #tpu.dot_dimension_numbers<[1], [0], [0], [1], [0, 0, 1, 1], [], []>} : vector<64x32xf32>, vector<32x32xf32>, vector<64x32xf32> -> vector<64x32xf32>
    %33 = arith.addf %29, %32 : vector<64x32xf32>
    %34 = vector.broadcast %26 : vector<64x1xf32> to vector<64x32xf32>
    %35 = arith.mulf %34, %33 : vector<64x32xf32>
    %c0_20 = arith.constant 0 : index
    %c0_21 = arith.constant 0 : index
    %36 = vector.load %arg4[%c0_20, %c0_21] : memref<1x32xf32, #tpu.memory_space<vmem>>, vector<1x32xf32>
    %37 = arith.mulf %26, %19 : vector<64x1xf32>
    %c0_22 = arith.constant 0 : index
    %c0_23 = arith.constant 0 : index
    %38 = vector.load %arg3[%c0_22, %c0_23] : memref<1x32xf32, #tpu.memory_space<vmem>>, vector<1x32xf32>
    %39 = vector.broadcast %37 : vector<64x1xf32> to vector<64x32xf32>
    %40 = vector.broadcast %38 : vector<1x32xf32> to vector<64x32xf32>
    %41 = arith.mulf %39, %40 : vector<64x32xf32>
    %42 = vector.broadcast %36 : vector<1x32xf32> to vector<64x32xf32>
    %43 = arith.subf %42, %41 : vector<64x32xf32>
    %44 = arith.addf %35, %43 : vector<64x32xf32>
    %c0_24 = arith.constant 0 : index
    %c0_25 = arith.constant 0 : index
    %45 = vector.load %arg5[%c0_24, %c0_25] : memref<64x32xf32, #tpu.memory_space<vmem>>, vector<64x32xf32>
    tpu.vector_store %arg5[%c0_24, %c0_25], %44 {strides = array<i32>} : memref<64x32xf32, #tpu.memory_space<vmem>>, vector<64x32xf32>,
    return
  }
  func.func @transform_0(%arg0: i32) -> (i32, i32, i32, i32) {
    %c0_i32 = arith.constant 0 : i32
    %c0_i32_0 = arith.constant 0 : i32
    %c0_i32_1 = arith.constant 0 : i32
    %c0_i32_2 = arith.constant 0 : i32
    return %arg0, %c0_i32, %c0_i32_0, %c0_i32_1 : i32, i32, i32, i32
  }
  func.func @transform_1(%arg0: i32) -> (i32, i32, i32) {
    %c0_i32 = arith.constant 0 : i32
    %c0_i32_0 = arith.constant 0 : i32
    %c0_i32_1 = arith.constant 0 : i32
    %c0_i32_2 = arith.constant 0 : i32
    return %c0_i32, %c0_i32_0, %c0_i32_1 : i32, i32, i32
  }
  func.func @transform_2(%arg0: i32) -> (i32, i32) {
    %c0_i32 = arith.constant 0 : i32
    %c0_i32_0 = arith.constant 0 : i32
    %c0_i32_1 = arith.constant 0 : i32
    return %c0_i32, %c0_i32_0 : i32, i32
  }
  func.func @transform_3(%arg0: i32) -> (i32, i32) {
    %c0_i32 = arith.constant 0 : i32
    %c0_i32_0 = arith.constant 0 : i32
    %c0_i32_1 = arith.constant 0 : i32
    return %c0_i32, %c0_i32_0 : i32, i32
  }
  func.func @transform_4(%arg0: i32) -> (i32, i32) {
    %c0_i32 = arith.constant 0 : i32
    %c0_i32_0 = arith.constant 0 : i32
    return %arg0, %c0_i32 : i32, i32
  }
}

</mosaic_0001>

<bundles_post_ra>
// kernel: tpu_custom_call.1
= control target key start
LH: loop header
LB: loop body
LE: loop exit
PB: predicated region body
PF: predicated region fallthrough
CT: control target
= control target key end

     0   :  { %9 = vsyncpa [#allocation3], 0  ;;  %s1526_s0 = inlined_call_operand.hbm [shape: f32[16,2,8,32], index: 0, kind: input, shape index: {}]   ;;  %s1527_s1 = inlined_call_operand.hbm [shape: f32[2,32,32], index: 1, kind: input, shape index: {}]   ;;  %s1528_s2 = inlined_call_operand.vmem [shape: f32[1,32], index: 2, kind: input, shape index: {}]   ;;  %s1529_s3 = inlined_call_operand.vmem [shape: f32[1,32], index: 3, kind: input, shape index: {}]   ;;  %s1530_s4 = inlined_call_operand.vmem [shape: f32[128,32], index: 4, kind: output, shape index: {}]  }
   0x1   :  { %11 = vsyncpa [#allocation3 + $0x1], 0 }
   0x2   :  { %12 = vsyncpa [#allocation5], 0  ;;  %s1026_s15 = smov 0   ;;  %s1028_s16 = smov 0  }
   0x3   :  { %s1030_s17 = smov 0   ;;  %s1032_s18 = smov 0  }
   0x4 LB: > { %s778_s19 = sadd.s32 4294967295, %s996_s18   ;;  %p38_p0 = scmp.ne.s32.totalorder %s988_s16, %s984_s15  ;;  %s996_s18 = sphi %s1032_s18, %s1538_s18   ;;  %s992_s17 = sphi %s1030_s17, %s1537_s17   ;;  %s988_s16 = sphi %s1028_s16, %s1536_s16   ;;  %s984_s15 = sphi %s1026_s15, %s1535_s15  }
   0x5   : > { %p1048_p1 = scmp.eq.s32.totalorder %s778_s19, 0  ;;  %p780_p2 = scmp.ge.s32.totalorder %s996_s18, 1 }
   0x6   : > { %p138_p3 = scmp.lt.s32.totalorder %s996_s18, 3  ;;  %s149_s24 = sshll.u32 %s1527_s1, 4  ;;  %s150_s24 = int_to_ptr.hbm [resolvable:$true] %s149_s24 }
   0x7   : > { %p1056_p4 = por %p1048_p1, %p38_p0  ;;  %s998_s26 = smov [#allocation4]  }
   0x8   : > { %p1063_p5 = pnand %p780_p2, %p138_p3  ;;  %s151_s27 = sshll.u32 %s998_s26, 4  ;;  %s152_s27 = int_to_ptr.vmem [resolvable:$true] %s151_s27 }
   0x9   : > { %s1072_s28 = sadd.s32 1, %s996_s18   ;;  %s999_s29 = smov 128  }
   0xa   : > { %p834_p6 = pneg %p1063_p5  ;;  %s1000_s30 = smov 8  }
   0xb   : > { %s22_s5 = ssub.s32 %s996_s18, %s1072_s28  ;;  %s25_s6 = sadd.s32 1, %s992_s17 }
   0xc   : > { %p835_p7 = pnand %p834_p6, %p1048_p1  ;;  %p23_p8 = scmp.eq.s32.totalorder %s22_s5, 0 }
   0xd   : > { %p32_p9 = scmp.ne.s32.totalorder %s992_s17, %s988_s16  ;;  %p33_p10 = scmp.eq.s32.totalorder %s996_s18, 0 }
   0xe   : > { %837 = dma.hbm_to_vmem [thread:$0]  (!%p835_p7), %s150_s24, 1024, %s152_s27, [#allocation5], %s999_s29, %s999_s29, %s1000_s30  }
   0xf   : > { %p843_p11 = scmp.lt.s32.totalorder %s996_s18, 2  ;;  %p34_p12 = por %p33_p10, %p32_p9 }
  0x10   : > { %s1085_s7 = scalar_select %p23_p8, %s992_s17, %s25_s6  }
  0x11   : > { %s171_s8 = sand.u32 1, %s992_s17   ;;  %s819_s10 = sshll.u32 %s996_s18, 7 }
  0x12   : > { %s783_s9 = sshll.u32 %s171_s8, 7  ;;  %s181_s13 = scalar_lea.hbm %s1526_s0, %s819_s10 }
  0x13   : > { %s175_s14 = scalar_lea.vmem [#allocation2], %s783_s9  ;;  %s182_s22 = sshll.u32 %s181_s13, 4  ;;  %s183_s22 = int_to_ptr.hbm [resolvable:$true] %s182_s22 }
  0x14   : > { %s184_s15 = sshll.u32 %s175_s14, 4  ;;  %p1092_p13 = pnand %p843_p11, %p34_p12  ;;  %s185_s15 = int_to_ptr.vmem [resolvable:$true] %s184_s15 }
  0x15   : > { %s172_s24 = scalar_lea.sflag [#allocation3], %s171_s8  ;;  %s928_s26 = sshra.s32 %s183_s22, 4  ;;  %s929_s26 = int_to_ptr.hbm [resolvable:$true] %s928_s26 }
  0x16   : > { %s930_s27 = scalar_lea.hbm %s929_s26, 128  ;;  %p932_p2 = pneg %p1092_p13 }
  0x17   : > { %p931_p0 = scmp.ne.s32.totalorder %s929_s26, %s930_s27  ;;  %s935_s9 = scalar_lea.hbm %s1526_s0, 256 }
  0x18   : > { %p936_p7 = scmp.lt.s32.totalorder %s929_s26, %s1526_s0  ;;  %p937_p8 = scmp.lt.s32.totalorder %s935_s9, %s930_s27 }
  0x19   : > { %p933_p3 = pnand %p932_p2, %p931_p0 }
  0x1a   : > { %p938_p9 = por %p937_p8, %p936_p7 }
  0x1b   : > { %p934_p6 = pneg %p933_p3 }
  0x1d   : > { %p939_p10 = pnand %p938_p9, %p934_p6 }
  0x1f   : > { %942 = shalt.err (!%p939_p10)
}
  0x20   : > { %841 = dma.hbm_to_vmem [thread:$0]  (!%p1092_p13), %s183_s22, 2048, %s185_s15, %s172_s24, %s999_s29, %s999_s29, %s1000_s30  }
  0x21   : > { %196 = sbr.rel (%p1063_p5) target bundleno = 277 (0x115), region = 36  ;;  %s198_s8 = sand.u32 (!%p1063_p5), 1, %s988_s16  }
  0x22   : > { %s788_s12 = sshll.u32 (!%p1063_p5), %s198_s8, 7  ;;  %s199_s13 = scalar_lea.sflag (!%p1063_p5), [#allocation3], %s198_s8 }
  0x23   : > { %s1112_s14 = scalar_lea.vmem (!%p1063_p5), [#allocation2], %s788_s12 }
  0x26   : > { %975 = dma.done.wait (%p1056_p4), %s199_s13, 2048  }
  0x27   : > { %977 = vsyncadd (%p1056_p4), %s199_s13, 4294965248 }
  0x28   : > { %979 = dma.done.wait (%p1048_p1), [#allocation5], 1024  }
  0x29   : > { %981 = vsyncadd (%p1048_p1), [#allocation5], 4294966272  ;;  %vm257_vm0 = vcmask 261120   ;;  %v1123_v0 = vld [vmem:[%s1112_s14 + $0x40] sm:$0xff]  ;;  %v1138_v6 = vld [vmem:[%s1112_s14 + $0x50] sm:$0xff]  ;;  %s1356_s20 = sshll.u32 %s778_s19, 3 }
  0x2a   : > { %v1126_v1 = vld [vmem:[%s1112_s14 + $0x20] sm:$0xff]  ;;  %v270_v3 = vsel %vm257_vm0, %v1123_v0, 0.0  ;;  %v1141_v7 = vld [vmem:[%s1112_s14 + $0x30] sm:$0xff]  ;;  %v273_v9 = vsel %vm257_vm0, %v1138_v6, 0.0  ;;  %v1153_v12 = vld [vmem:[%s1112_s14 + $0x8] sm:$0xff]  ;;  %v318_v44 = vmul.f32 %v1123_v0, %v1123_v0  ;;  %v319_v52 = vmul.f32 %v1138_v6, %v1138_v6  ;;  %p235_p1 = scmp.lt.s32.totalorder %s1356_s20, 15 }
  0x2b   : > { %v1129_v2 = vld [vmem:[%s1112_s14] sm:$0xff]  ;;  %v264_v4 = vsel %vm257_vm0, %v1126_v1, 0.0  ;;  %271 = vadd.xlane.f32.xlu2 %v270_v3  ;;  %v1144_v8 = vld [vmem:[%s1112_s14 + $0x10] sm:$0xff]  ;;  %v267_v10 = vsel %vm257_vm0, %v1141_v7, 0.0  ;;  %v282_v15 = vsel %vm257_vm0, %v1153_v12, 0.0  ;;  %v514_v18 = vld [vmem:[#allocation4 + $0x38] sm:$0xff]  ;;  %v317_v45 = vmul.f32 %v1141_v7, %v1141_v7 }
  0x2c   : > { %v258_v5 = vsel %vm257_vm0, %v1129_v2, 0.0  ;;  %265 = vadd.xlane.f32.xlu1 %v264_v4  ;;  %v261_v11 = vsel %vm257_vm0, %v1144_v8, 0.0  ;;  %v1156_v13 = vld [vmem:[%s1112_s14 + $0x70] sm:$0xff]  ;;  %v1159_v14 = vld [vmem:[%s1112_s14 + $0x60] sm:$0xff]  ;;  %v509_v19 = vld [vmem:[#allocation4 + $0x18] sm:$0xff]  ;;  %551 = vmatpush.msra.mxu0 %v514_v18  ;;  %v315_v38 = vmul.f32 %v1144_v8, %v1144_v8  ;;  %v314_v39 = vmul.f32 %v1129_v2, %v1129_v2  ;;  %s1540_s20 = smov (!%p235_p1, %s1356_s20), 15 }
  0x2d   : > { %259 = vadd.xlane.f32.xlu0 %v258_v5  ;;  %v279_v16 = vsel %vm257_vm0, %v1156_v13, 0.0  ;;  %v276_v17 = vsel %vm257_vm0, %v1159_v14, 0.0  ;;  %v1168_v20 = vld [vmem:[%s1112_s14 + $0x38] sm:$0xff]  ;;  %v1171_v21 = vld [vmem:[%s1112_s14 + $0x28] sm:$0xff]  ;;  %616 = vmatpush.msra.mxu1 %v509_v19  ;;  %v513_v26 = vld [vmem:[#allocation4 + $0x30] sm:$0xff]  ;;  %v316_v46 = vmul.f32 %v1126_v1, %v1126_v1  ;;  %v334_v47 = vsel %vm257_vm0, %v318_v44, 0.0 }
  0x2e   : > { %v1174_v22 = vld [vmem:[%s1112_s14 + $0x18] sm:$0xff]  ;;  %820 = vmatpush.msra.mxu2 %v514_v18  ;;  %824 = vmatpush.msra.mxu3 %v509_v19  ;;  %v291_v23 = vsel %vm257_vm0, %v1168_v20, 0.0  ;;  %v288_v24 = vsel %vm257_vm0, %v1171_v21, 0.0  ;;  %v508_v27 = vld [vmem:[#allocation4 + $0x10] sm:$0xff]  ;;  %v512_v28 = vld [vmem:[#allocation4 + $0x28] sm:$0xff]  ;;  %v325_v41 = vsel %vm257_vm0, %v315_v38, 0.0  ;;  %v321_v50 = vmul.f32 %v1156_v13, %v1156_v13 }
  0x2f   : > { %v285_v25 = vsel %vm257_vm0, %v1174_v22, 0.0  ;;  %v1183_v29 = vld [vmem:[%s1112_s14 + $0x68] sm:$0xff]  ;;  %v1186_v30 = vld [vmem:[%s1112_s14 + $0x58] sm:$0xff]  ;;  %552 = vmatpush.msra.mxu0 %v513_v26  ;;  %617 = vmatpush.msra.mxu1 %v508_v27  ;;  %v511_v33 = vld [vmem:[#allocation4 + $0x20] sm:$0xff]  ;;  %v322_v42 = vsel %vm257_vm0, %v314_v39, 0.0  ;;  %v331_v48 = vsel %vm257_vm0, %v317_v45, 0.0  ;;  %v320_v51 = vmul.f32 %v1159_v14, %v1159_v14 }
  0x30   : > { %v507_v31 = vld [vmem:[#allocation4 + $0x8] sm:$0xff]  ;;  %821 = vmatpush.msra.mxu2 %v513_v26  ;;  %825 = vmatpush.msra.mxu3 %v508_v27  ;;  %v506_v34 = vld [vmem:[#allocation4] sm:$0xff]  ;;  %v300_v35 = vsel %vm257_vm0, %v1183_v29, 0.0  ;;  %v297_v36 = vsel %vm257_vm0, %v1186_v30, 0.0  ;;  %v799_v40 = vld [vmem:[%s1112_s14 + $0x78] sm:$0xff]  ;;  %v328_v49 = vsel %vm257_vm0, %v316_v46, 0.0  ;;  %v348_v56 = vmul.f32 %v1171_v21, %v1171_v21 }
  0x31   : > { %v1189_v32 = vld [vmem:[%s1112_s14 + $0x48] sm:$0xff]  ;;  %553 = vmatpush.msra.mxu0 %v512_v28  ;;  %618 = vmatpush.msra.mxu1 %v507_v31  ;;  %v303_v43 = vsel %vm257_vm0, %v799_v40, 0.0  ;;  %v343_v53 = vsel %vm257_vm0, %v321_v50, 0.0  ;;  %v340_v54 = vsel %vm257_vm0, %v320_v51, 0.0  ;;  %v337_v55 = vsel %vm257_vm0, %v319_v52, 0.0  ;;  %s791_s29 = sshll.u32 %s1540_s20, 3 }
  0x32   : > { %822 = vmatpush.msra.mxu2 %v512_v28  ;;  %826 = vmatpush.msra.mxu3 %v507_v31  ;;  %v294_v37 = vsel %vm257_vm0, %v1189_v32, 0.0  ;;  %v347_v57 = vmul.f32 %v1174_v22, %v1174_v22  ;;  %v346_v58 = vmul.f32 %v1153_v12, %v1153_v12  ;;  %v360_v59 = vsel %vm257_vm0, %v348_v56, 0.0  ;;  %s1439_s22 = scalar_lea.vmem %s1530_s4, %s791_s29 }
  0x33   : > { %274 = vadd.xlane.f32.xlu2 %v273_v9  ;;  %554 = vmatpush.msra.mxu0 %v511_v33  ;;  %v351_v62 = vmul.f32 %v1186_v30, %v1186_v30  ;;  %v350_v63 = vmul.f32 %v1189_v32, %v1189_v32  ;;  %v353_v4 = vmul.f32 %v799_v40, %v799_v40 }
  0x34   : > { %268 = vadd.xlane.f32.xlu1 %v267_v10  ;;  %619 = vmatpush.msra.mxu1 %v506_v34  ;;  %v357_v60 = vsel %vm257_vm0, %v347_v57, 0.0  ;;  %v354_v61 = vsel %vm257_vm0, %v346_v58, 0.0  ;;  %v352_v5 = vmul.f32 %v1183_v29, %v1183_v29 }
  0x35   : > { %262 = vadd.xlane.f32.xlu0 %v261_v11  ;;  %800 = vmatmul.msk.f32.vlgmr.msra.gmra.mxu0 %vm257_vm0, %v1153_v12 }
  0x36   : > { %808 = vmatmul.msk.f32.vlgmr.msra.gmra.mxu1 %vm257_vm0, %v1129_v2  ;;  %823 = vmatpush.msra.mxu2 %v511_v33  ;;  %v366_v2 = vsel %vm257_vm0, %v350_v63, 0.0 }
  0x37   : > { %827 = vmatpush.msra.mxu3 %v506_v34  ;;  %804 = vmatmul.msk.f32.vlgmr.msra.gmra.mxu2 %vm257_vm0, %v1189_v32 }
  0x38   : > { %812 = vmatmul.msk.f32.vlgmr.msra.gmra.mxu3 %vm257_vm0, %v1123_v0  ;;  %v349_v0 = vmul.f32 %v1168_v20, %v1168_v20 }
  0x3a   : > { %v363_v3 = vsel %vm257_vm0, %v349_v0, 0.0 }
  0x3b   : > { %283 = vadd.xlane.f32.xlu2 %v282_v15 }
  0x3c   : > { %280 = vadd.xlane.f32.xlu1 %v279_v16 }
  0x3d   : > { %277 = vadd.xlane.f32.xlu0 %v276_v17  ;;  %801 = vmatmul.msk.f32.gmra.mxu0 %vm257_vm0, %v1174_v22 }
  0x3e   : > { %809 = vmatmul.msk.f32.gmra.mxu1 %vm257_vm0, %v1144_v8 }
  0x3f   : > { %805 = vmatmul.msk.f32.gmra.mxu2 %vm257_vm0, %v1186_v30 }
  0x40   : > { %813 = vmatmul.msk.f32.gmra.mxu3 %vm257_vm0, %v1138_v6  ;;  %v375_v6 = vsel %vm257_vm0, %v353_v4, 0.0 }
  0x43   : > { %292 = vadd.xlane.f32.xlu2 %v291_v23 }
  0x44   : > { %289 = vadd.xlane.f32.xlu1 %v288_v24 }
  0x45   : > { %286 = vadd.xlane.f32.xlu0 %v285_v25  ;;  %802 = vmatmul.msk.f32.gmra.mxu0 %vm257_vm0, %v1171_v21 }
  0x46   : > { %810 = vmatmul.msk.f32.gmra.mxu1 %vm257_vm0, %v1126_v1  ;;  %v369_v1 = vsel %vm257_vm0, %v351_v62, 0.0 }
  0x47   : > { %806 = vmatmul.msk.f32.gmra.mxu2 %vm257_vm0, %v1183_v29 }
  0x48   : > { %814 = vmatmul.msk.f32.gmra.mxu3 %vm257_vm0, %v1159_v14 }
  0x4b   : > { %301 = vadd.xlane.f32.xlu2 %v300_v35 }
  0x4c   : > { %298 = vadd.xlane.f32.xlu1 %v297_v36 }
  0x4d   : > { %295 = vadd.xlane.f32.xlu0 %v294_v37  ;;  %803 = vmatmul.msk.f32.gmra.mxu0 %vm257_vm0, %v1168_v20 }
  0x4e   : > { %811 = vmatmul.msk.f32.gmra.mxu1 %vm257_vm0, %v1141_v7  ;;  %v372_v7 = vsel %vm257_vm0, %v352_v5, 0.0 }
  0x4f   : > { %807 = vmatmul.msk.f32.gmra.mxu2 %vm257_vm0, %v799_v40 }
  0x50   : > { %815 = vmatmul.msk.f32.gmra.mxu3 %vm257_vm0, %v1156_v13 }
  0x53   : > { %326 = vadd.xlane.f32.xlu2 %v325_v41 }
  0x54   : > { %323 = vadd.xlane.f32.xlu1 %v322_v42 }
  0x55   : > { %304 = vadd.xlane.f32.xlu0 %v303_v43 }
  0x5b   : > { %335 = vadd.xlane.f32.xlu2 %v334_v47 }
  0x5c   : > { %332 = vadd.xlane.f32.xlu1 %v331_v48 }
  0x5d   : > { %329 = vadd.xlane.f32.xlu0 %v328_v49 }
  0x63   : > { %344 = vadd.xlane.f32.xlu2 %v343_v53 }
  0x64   : > { %341 = vadd.xlane.f32.xlu1 %v340_v54 }
  0x65   : > { %338 = vadd.xlane.f32.xlu0 %v337_v55 }
  0x6b   : > { %361 = vadd.xlane.f32.xlu2 %v360_v59 }
  0x6c   : > { %358 = vadd.xlane.f32.xlu1 %v357_v60 }
  0x6d   : > { %355 = vadd.xlane.f32.xlu0 %v354_v61 }
  0x73   : > { %370 = vadd.xlane.f32.xlu2 %v369_v1 }
  0x74   : > { %367 = vadd.xlane.f32.xlu1 %v366_v2 }
  0x75   : > { %364 = vadd.xlane.f32.xlu0 %v363_v3 }
  0x7c   : > { %376 = vadd.xlane.f32.xlu1 %v375_v6 }
  0x7d   : > { %373 = vadd.xlane.f32.xlu0 %v372_v7 }
  0x9e   : > { %v272_v8 = vpop.xlane.xlu2 %271 }
  0x9f   : > { %v266_v9 = vpop.xlane.xlu1 %265 }
  0xa0   : > { %v260_v10 = vpop.xlane.xlu0 %259 }
  0xa6   : > { %v275_v11 = vpop.xlane.xlu2 %274 }
  0xa7   : > { %v269_v12 = vpop.xlane.xlu1 %268 }
  0xa8   : > { %v263_v13 = vpop.xlane.xlu0 %262 }
  0xae   : > { %v284_v14 = vpop.xlane.xlu2 %283 }
  0xaf   : > { %v281_v15 = vpop.xlane.xlu1 %280  ;;  %v306_v34 = vadd.f32 %v284_v14, %v260_v10 }
  0xb0   : > { %v278_v16 = vpop.xlane.xlu0 %277 }
  0xb1   : > { %v1288_v39 = vmul.f32 0.015625, %v306_v34 }
  0xb2   : > { %v1280_v35 = vpop.f32.mrf.mxu0 }
  0xb3   : > { %v1282_v36 = vpop.f32.mrf.mxu1  ;;  %v402_v52 = vmul.f32 %v1288_v39, %v1288_v39 }
  0xb6   : > { %v293_v17 = vpop.xlane.xlu2 %292 }
  0xb7   : > { %v290_v18 = vpop.xlane.xlu1 %289  ;;  %v309_v53 = vadd.f32 %v293_v17, %v269_v12 }
  0xb8   : > { %v287_v19 = vpop.xlane.xlu0 %286  ;;  %v308_v32 = vadd.f32 %v290_v18, %v266_v9 }
  0xb9   : > { %v307_v33 = vadd.f32 %v287_v19, %v263_v13  ;;  %v1304_v0 = vmul.f32 0.015625, %v309_v53 }
  0xba   : > { %v1284_v37 = vmul.f32 0.015625, %v308_v32  ;;  %v559_v59 = vpop.f32.mrf.mxu0 }
  0xbb   : > { %v1286_v38 = vmul.f32 0.015625, %v307_v33  ;;  %v624_v63 = vpop.f32.mrf.mxu1  ;;  %v405_v14 = vmul.f32 %v1304_v0, %v1304_v0 }
  0xbc   : > { %v404_v45 = vmul.f32 %v1284_v37, %v1284_v37 }
  0xbd   : > { %v403_v48 = vmul.f32 %v1286_v38, %v1286_v38 }
  0xbe   : > { %v302_v20 = vpop.xlane.xlu2 %301 }
  0xbf   : > { %v299_v21 = vpop.xlane.xlu1 %298  ;;  %v312_v1 = vadd.f32 %v302_v20, %v278_v16  ;;  %v1321_v20 = vpop.f32.mrf.mxu2 }
  0xc0   : > { %v296_v22 = vpop.xlane.xlu0 %295  ;;  %v311_v46 = vadd.f32 %v299_v21, %v275_v11  ;;  %v1323_v21 = vpop.f32.mrf.mxu3 }
  0xc1   : > { %v310_v49 = vadd.f32 %v296_v22, %v272_v8 }
  0xc2   : > { %v1296_v57 = vmul.f32 0.015625, %v311_v46  ;;  %v562_v33 = vpop.f32.mrf.mxu0 }
  0xc3   : > { %v1298_v60 = vmul.f32 0.015625, %v310_v49 }
  0xc4   : > { %v407_v9 = vmul.f32 %v1296_v57, %v1296_v57 }
  0xc5   : > { %v406_v11 = vmul.f32 %v1298_v60, %v1298_v60 }
  0xc6   : > { %v327_v23 = vpop.xlane.xlu2 %326 }
  0xc7   : > { %v324_v24 = vpop.xlane.xlu1 %323 }
  0xc8   : > { %v305_v25 = vpop.xlane.xlu0 %304 }
  0xc9   : > { %v313_v5 = vadd.f32 %v305_v25, %v281_v15  ;;  %v1317_v15 = vmul.f32 0.015625, %v312_v1  ;;  %v1373_v1 = vpop.f32.mrf.mxu3 }
  0xcb   : > { %v1319_v17 = vmul.f32 0.015625, %v313_v5 }
  0xce   : > { %v336_v26 = vpop.xlane.xlu2 %335 }
  0xcf   : > { %v333_v27 = vpop.xlane.xlu1 %332 }
  0xd0   : > { %v330_v28 = vpop.xlane.xlu0 %329 }
  0xd6   : > { %v1276_v29 = vpop.xlane.xlu2 %344 }
  0xd7   : > { %v1278_v30 = vpop.xlane.xlu1 %341 }
  0xd8   : > { %v339_v31 = vpop.xlane.xlu0 %338 }
  0xde   : > { %v362_v40 = vpop.xlane.xlu2 %361 }
  0xdf   : > { %v359_v41 = vpop.xlane.xlu1 %358  ;;  %v380_v42 = vadd.f32 %v362_v40, %v330_v28  ;;  %v409_v40 = vmul.f32 %v1319_v17, %v1319_v17 }
  0xe0   : > { %v379_v43 = vadd.f32 %v359_v41, %v327_v23  ;;  %v356_v44 = vpop.xlane.xlu0 %355 }
  0xe1   : > { %v378_v47 = vadd.f32 %v356_v44, %v324_v24  ;;  %v396_v50 = vmul.f32 0.015625, %v380_v42  ;;  %v1346_v42 = vadd.f32 %v1282_v36, %v1280_v35  ;;  %v627_v44 = vpop.f32.mrf.mxu1 }
  0xe2   : > { %v395_v51 = vmul.f32 0.015625, %v379_v43 }
  0xe3   : > { %v394_v54 = vmul.f32 0.015625, %v378_v47  ;;  %v412_v55 = vsub.f32 %v396_v50, %v404_v45  ;;  %v1351_v47 = vadd.f32 %v624_v63, %v559_v59  ;;  %v1371_v63 = vpop.f32.mrf.mxu2 }
  0xe4   : > { %v411_v56 = vsub.f32 %v395_v51, %v403_v48  ;;  %v1362_v51 = vadd.f32 %v627_v44, %v562_v33 }
  0xe5   : > { %v410_v58 = vsub.f32 %v394_v54, %v402_v52  ;;  %v1300_v61 = vadd.f32 1e-05, %v412_v55 }
  0xe6   : > { %v1302_v62 = vadd.f32 1e-05, %v411_v56  ;;  %v371_v3 = vpop.xlane.xlu2 %370 }
  0xe7   : > { %v1306_v2 = vadd.f32 1e-05, %v410_v58  ;;  %v368_v4 = vpop.xlane.xlu1 %367  ;;  %882 = vrsqrt.f32 %v1300_v61  ;;  %v383_v6 = vadd.f32 %v371_v3, %v339_v31  ;;  %vm452_vm3 = vweird.f32 %v1300_v61 }
  0xe8   : > { %v382_v7 = vadd.f32 %v368_v4, %v336_v26  ;;  %v365_v8 = vpop.xlane.xlu0 %364  ;;  %884 = vrsqrt.f32 %v1302_v62  ;;  %vm442_vm1 = vweird.f32 %v1302_v62 }
  0xe9   : > { %v381_v10 = vadd.f32 %v365_v8, %v333_v27  ;;  %886 = vrsqrt.f32 %v1306_v2  ;;  %v399_v12 = vmul.f32 0.015625, %v383_v6  ;;  %v408_v27 = vmul.f32 %v1317_v15, %v1317_v15 }
  0xea   : > { %v398_v13 = vmul.f32 0.015625, %v382_v7  ;;  %vm432_vm2 = vweird.f32 %v1306_v2 }
  0xeb   : > { %v397_v16 = vmul.f32 0.015625, %v381_v10  ;;  %v415_v18 = vsub.f32 %v399_v12, %v407_v9 }
  0xec   : > { %v414_v19 = vsub.f32 %v398_v13, %v406_v11  ;;  %v1398_v13 = vld [vmem:[%s1528_s2] ss:$0 sm:$0xff] }
  0xed   : > { %v413_v22 = vsub.f32 %v397_v16, %v405_v14  ;;  %v1325_v23 = vpop.eup %882  ;;  %v1327_v24 = vadd.f32 1e-05, %v415_v18 }
  0xee   : > { %v1329_v25 = vadd.f32 1e-05, %v414_v19  ;;  %v1331_v26 = vpop.eup %884  ;;  %v447_v28 = vmul.f32 %v1325_v23, %v1300_v61  ;;  %vm453_vm4 = vweird.f32 %v1325_v23 }
  0xef   : > { %v1337_v31 = vadd.f32 1e-05, %v413_v22  ;;  %v377_v32 = vpop.xlane.xlu1 %376  ;;  %v887_v34 = vpop.eup %886  ;;  %v437_v41 = vmul.f32 %v1331_v26, %v1302_v62  ;;  %888 = vrsqrt.f32 %v1327_v24  ;;  %vm443_vm5 = vweird.f32 %v1331_v26  ;;  %vm454_vm8 = vmor %vm452_vm3, %vm453_vm4  ;;  %v1418_v62 = vld [vmem:[%s1529_s3] ss:$0 sm:$0xff] }
  0xf0   : > { %v374_v43 = vpop.xlane.xlu0 %373  ;;  %v448_v45 = vmul.f32 %v1325_v23, %v447_v28  ;;  %v427_v46 = vmul.f32 %v887_v34, %v1306_v2  ;;  %890 = vrsqrt.f32 %v1329_v25  ;;  %v385_v35 = vadd.f32 %v377_v32, %v1276_v29  ;;  %vm444_vm9 = vmor %vm442_vm1, %vm443_vm5 }
  0xf1   : > { %v438_v48 = vmul.f32 %v1331_v26, %v437_v41  ;;  %892 = vrsqrt.f32 %v1337_v31  ;;  %v384_v36 = vadd.f32 %v374_v43, %v1278_v30  ;;  %vm433_vm6 = vweird.f32 %v887_v34 }
  0xf2   : > { %v428_v49 = vmul.f32 %v887_v34, %v427_v46  ;;  %v449_v50 = vmul.f32 0.5, %v448_v45  ;;  %v401_v53 = vmul.f32 0.015625, %v385_v35  ;;  %vm472_vm7 = vweird.f32 %v1329_v25  ;;  %vm434_vm11 = vmor %vm432_vm2, %vm433_vm6 }
  0xf3   : > { %v439_v52 = vmul.f32 0.5, %v438_v48  ;;  %v400_v54 = vmul.f32 0.015625, %v384_v36  ;;  %vm482_vm10 = vweird.f32 %v1327_v24  ;;  %vm462_vm12 = vweird.f32 %v1337_v31 }
  0xf4   : > { %v429_v55 = vmul.f32 0.5, %v428_v49  ;;  %v450_v56 = vsub.f32 1.5, %v449_v50  ;;  %v417_v58 = vsub.f32 %v401_v53, %v409_v40 }
  0xf5   : > { %v1368_v29 = vpop.eup %888  ;;  %v440_v30 = vsub.f32 1.5, %v439_v52  ;;  %v416_v59 = vsub.f32 %v400_v54, %v408_v27 }
  0xf6   : > { %v891_v3 = vpop.eup %890  ;;  %v477_v4 = vmul.f32 %v1368_v29, %v1327_v24  ;;  %v430_v5 = vsub.f32 1.5, %v429_v55  ;;  %v451_v6 = vmul.f32 %v1325_v23, %v450_v56  ;;  %v1383_v10 = vadd.f32 1e-05, %v417_v58 }
  0xf7   : > { %v1378_v7 = vpop.eup %892  ;;  %v467_v8 = vmul.f32 %v891_v3, %v1329_v25  ;;  %v441_v9 = vmul.f32 %v1331_v26, %v440_v30  ;;  %v1406_v61 = vadd.f32 1e-05, %v416_v59  ;;  %vm483_vm13 = vweird.f32 %v1368_v29 }
  0xf8   : > { %v478_v11 = vmul.f32 %v1368_v29, %v477_v4  ;;  %v431_v12 = vmul.f32 %v887_v34, %v430_v5  ;;  %v457_v14 = vmul.f32 %v1378_v7, %v1337_v31  ;;  %894 = vrsqrt.f32 %v1383_v10  ;;  %vm484_vm2 = vmor %vm482_vm10, %vm483_vm13  ;;  %v565_v4 = vpop.f32.mrf.mxu0 }
  0xf9   : > { %v468_v16 = vmul.f32 %v891_v3, %v467_v8  ;;  %v445_v18 = vsel %vm444_vm9, %v1331_v26, %v441_v9  ;;  %v455_v19 = vsel %vm454_vm8, %v1325_v23, %v451_v6  ;;  %896 = vrsqrt.f32 %v1406_v61 }
  0xfa   : > { %v435_v22 = vsel %vm434_vm11, %v887_v34, %v431_v12  ;;  %v458_v27 = vmul.f32 %v1378_v7, %v457_v14  ;;  %v655_v28 = vmul.f32 %v445_v18, %v1286_v38  ;;  %vm473_vm14 = vweird.f32 %v891_v3 }
  0xfb   : > { %v654_v2 = vmul.f32 %v435_v22, %v1288_v39  ;;  %v469_v32 = vmul.f32 0.5, %v468_v16  ;;  %v656_v26 = vmul.f32 %v455_v19, %v1284_v37  ;;  %v479_v33 = vmul.f32 0.5, %v478_v11  ;;  %vm474_vm1 = vmor %vm472_vm7, %vm473_vm14 }
  0xfc   : > { %v667_v23 = vmul.f32 %v1398_v13, %v655_v28  ;;  %v646_v38 = vmul.f32 %v1351_v47, %v445_v18  ;;  %v459_v41 = vmul.f32 0.5, %v458_v27  ;;  %v645_v39 = vmul.f32 %v1346_v42, %v435_v22  ;;  %v1442_v47 = vpop.f32.mrf.mxu2  ;;  %v1445_v42 = vpop.f32.mrf.mxu3 }
  0xfd   : > { %v666_v34 = vmul.f32 %v1398_v13, %v654_v2  ;;  %v470_v40 = vsub.f32 1.5, %v469_v32  ;;  %v668_v44 = vmul.f32 %v1398_v13, %v656_v26  ;;  %v480_v45 = vsub.f32 1.5, %v479_v33 }
  0xfe   : > { %v678_v43 = vsub.f32 %v1418_v62, %v667_v23  ;;  %v1434_v46 = vpop.eup %894  ;;  %v460_v35 = vsub.f32 1.5, %v459_v41  ;;  %vm463_vm15 = vweird.f32 %v1378_v7  ;;  %v647_v56 = vmul.f32 %v1362_v51, %v455_v19  ;;  %v630_v51 = vpop.f32.mrf.mxu1 }
  0xff   : > { %v677_v37 = vsub.f32 %v1418_v62, %v666_v34  ;;  %v471_v48 = vmul.f32 %v891_v3, %v470_v40  ;;  %v497_v49 = vmul.f32 %v1434_v46, %v1383_v10  ;;  %v679_v50 = vsub.f32 %v1418_v62, %v668_v44  ;;  %v897_v53 = vpop.eup %896  ;;  %vm464_vm3 = vmor %vm462_vm12, %vm463_vm15 }
 0x100   : > { %v686_v36 = vadd.f32 %v678_v43, %v646_v38  ;;  %v481_v52 = vmul.f32 %v1368_v29, %v480_v45  ;;  %v461_v25 = vmul.f32 %v1378_v7, %v460_v35  ;;  %v487_v59 = vmul.f32 %v897_v53, %v1406_v61 }
 0x101   : > { %v685_v54 = vadd.f32 %v677_v37, %v645_v39  ;;  %v475_v55 = vsel %vm474_vm1, %v891_v3, %v471_v48  ;;  %v498_v58 = vmul.f32 %v1434_v46, %v497_v49  ;;  %v687_v24 = vadd.f32 %v679_v50, %v647_v56 }
 0x102   : > { %694 = vst.msk [vmem:[%s1439_s22 + $0x8] sm:$0xff] %vm257_vm0, %v686_v36  ;;  %v658_v30 = vmul.f32 %v475_v55, %v1298_v60  ;;  %v485_v3 = vsel %vm484_vm2, %v1368_v29, %v481_v52  ;;  %v465_v5 = vsel %vm464_vm3, %v1378_v7, %v461_v25  ;;  %v634_v60 = vadd.f32 %v1323_v21, %v1321_v20 }
 0x103   : > { %693 = vst.msk [vmem:[%s1439_s22] sm:$0xff] %vm257_vm0, %v685_v54  ;;  %v488_v8 = vmul.f32 %v897_v53, %v487_v59  ;;  %v659_v9 = vmul.f32 %v485_v3, %v1296_v57  ;;  %v637_v31 = vadd.f32 %v1373_v1, %v1371_v63  ;;  %v631_v11 = vadd.f32 %v630_v51, %v565_v4 }
 0x104   : > { %v670_v6 = vmul.f32 %v1398_v13, %v658_v30  ;;  %695 = vst.msk [vmem:[%s1439_s22 + $0x10] sm:$0xff] %vm257_vm0, %v687_v24  ;;  %v657_v12 = vmul.f32 %v465_v5, %v1304_v0  ;;  %v499_v14 = vmul.f32 0.5, %v498_v58  ;;  %v649_v29 = vmul.f32 %v634_v60, %v475_v55  ;;  %v577_v27 = vpop.f32.mrf.mxu2  ;;  %v642_v2 = vpop.f32.mrf.mxu3 }
 0x105   : > { %v671_v16 = vmul.f32 %v1398_v13, %v659_v9  ;;  %v489_v20 = vmul.f32 0.5, %v488_v8  ;;  %vm493_vm4 = vweird.f32 %v897_v53  ;;  %vm503_vm5 = vweird.f32 %v1434_v46 }
 0x106   : > { %v681_v7 = vsub.f32 %v1418_v62, %v670_v6  ;;  %v669_v21 = vmul.f32 %v1398_v13, %v657_v12  ;;  %v500_v57 = vsub.f32 1.5, %v499_v14  ;;  %v650_v19 = vmul.f32 %v637_v31, %v485_v3 }
 0x107   : > { %v682_v63 = vsub.f32 %v1418_v62, %v671_v16  ;;  %v490_v0 = vsub.f32 1.5, %v489_v20  ;;  %v648_v1 = vmul.f32 %v631_v11, %v465_v5  ;;  %vm502_vm6 = vweird.f32 %v1383_v10 }
 0x108   : > { %v689_v18 = vadd.f32 %v681_v7, %v649_v29  ;;  %v680_v22 = vsub.f32 %v1418_v62, %v669_v21  ;;  %v501_v28 = vmul.f32 %v1434_v46, %v500_v57  ;;  %vm492_vm7 = vweird.f32 %v1406_v61  ;;  %vm504_vm8 = vmor %vm502_vm6, %vm503_vm5 }
 0x109   : > { %v690_v32 = vadd.f32 %v682_v63, %v650_v19  ;;  %v491_v23 = vmul.f32 %v897_v53, %v490_v0  ;;  %vm494_vm9 = vmor %vm492_vm7, %vm493_vm4  ;;  %v643_v34 = vadd.f32 %v642_v2, %v577_v27  ;;  %v640_v41 = vadd.f32 %v1445_v42, %v1442_v47 }
 0x10a   : > { %697 = vst.msk [vmem:[%s1439_s22 + $0x20] sm:$0xff] %vm257_vm0, %v689_v18  ;;  %v688_v26 = vadd.f32 %v680_v22, %v648_v1  ;;  %v505_v33 = vsel %vm504_vm8, %v1434_v46, %v501_v28 }
 0x10b   : > { %698 = vst.msk [vmem:[%s1439_s22 + $0x28] sm:$0xff] %vm257_vm0, %v690_v32  ;;  %v495_v10 = vsel %vm494_vm9, %v897_v53, %v491_v23  ;;  %v661_v38 = vmul.f32 %v505_v33, %v1319_v17  ;;  %v652_v43 = vmul.f32 %v643_v34, %v505_v33 }
 0x10c   : > { %696 = vst.msk [vmem:[%s1439_s22 + $0x18] sm:$0xff] %vm257_vm0, %v688_v26  ;;  %v660_v61 = vmul.f32 %v495_v10, %v1317_v15  ;;  %v651_v45 = vmul.f32 %v640_v41, %v495_v10 }
 0x10d   : > { %v673_v40 = vmul.f32 %v1398_v13, %v661_v38 }
 0x10e   : > { %v672_v39 = vmul.f32 %v1398_v13, %v660_v61 }
 0x10f   : > { %v684_v44 = vsub.f32 %v1418_v62, %v673_v40 }
 0x110   : > { %v683_v46 = vsub.f32 %v1418_v62, %v672_v39 }
 0x111   : > { %v692_v37 = vadd.f32 %v684_v44, %v652_v43 }
 0x112   : > { %v691_v48 = vadd.f32 %v683_v46, %v651_v45 }
 0x113   : > { %700 = vst.msk [vmem:[%s1439_s22 + $0x38] sm:$0xff] %vm257_vm0, %v692_v37 }
 0x114   : > { %699 = vst.msk [vmem:[%s1439_s22 + $0x30] sm:$0xff] %vm257_vm0, %v691_v48 }
 0x115 PF: > { %p15_p4 = scmp.ge.s32.totalorder %s1072_s28, 4   ;;  %s1535_s15 = smov %s988_s16 }
 0x116   : > { %s1536_s16 = smov %s992_s17  ;;  %s1537_s17 = smov %s1085_s7 }
 0x117   : > { %s1538_s18 = smov %s1072_s28  ;;  %17 = sbr.rel (!%p15_p4) target bundleno = 4 (0x4), region = 82 }
 0x11c   :  { %723 = vsyncpa [#allocation3], 1 }
 0x11d   :  { %725 = vsyncpa [#allocation3 + $0x1], 1 }
 0x11e   :  { %726 = vsyncpa [#allocation5], 1 }

</bundles_post_ra>
